<compile_context>
chip_gen: v5e
topology: v5e:2x2
jax: 0.10.0
libtpu: 0.0.40
codegen_flags: <defaults>
</compile_context>

<pallas_src>
import math
import numpy as np
import jax
import jax.numpy as jnp
from jax.experimental import pallas as pl
from jax.experimental.pallas import tpu as pltpu

# ----------------------------- configuration --------------------------------
STATE_SIZE = 4            # n_qubits
ACTION_SIZE = 2
QNN_LAYERS = 2
ACTION_LIM = 1.0
LAST_W_SCALE = 0.001
BATCH = 512               # batched call (amortizes dispatch / per-step overhead)
TILE_B = 256              # batch tile; multiple of 128 -> lane-dense everywhere
DIM = 2 ** STATE_SIZE     # statevector dimension

_LOG2 = math.log(2.0)
_HALF_LOG_2PI = 0.5 * math.log(2.0 * math.pi)

# constant-slab layout (rows x cols = 48 x 16, f32); all operands lane-0 aligned
SLAB_COLS = DIM                                  # 16
SLAB_ROWS = 48
VRE_ROW = 0                                      # rows  0..15 : Re(U @ diag(ph))
VIM_ROW = DIM                                    # rows 16..31 : Im(U @ diag(ph))
MT_ROW = 2 * DIM                                 # rows 32..35 : W @ zsign^T  (2A, dim)
BIAS_ROW = 40                                    # rows 40..43 : bias column (2A, 1)

OUT_ROWS = 8                                     # [action(2) | mean(2) | std(2) | log_pi(1) | pad(1)]


# ---------------- host-side (glue): compile the fixed entangler -------------
def _rot(phi, theta, omega):
    c, s = np.cos(theta / 2.0), np.sin(theta / 2.0)
    return np.array(
        [[np.exp(-1j * (phi + omega) / 2.0) * c, -np.exp(1j * (phi - omega) / 2.0) * s],
         [np.exp(-1j * (phi - omega) / 2.0) * s, np.exp(1j * (phi + omega) / 2.0) * c]],
        dtype=np.complex128)


def _kron_single(gate, wire, n):
    return np.kron(np.kron(np.eye(2 ** wire), gate), np.eye(2 ** (n - 1 - wire)))


def _cnot(control, target, n):
    dim = 2 ** n
    m = np.zeros((dim, dim), dtype=np.complex128)
    for b in range(dim):
        if (b >> (n - 1 - control)) & 1:
            m[b ^ (1 << (n - 1 - target)), b] = 1.0
        else:
            m[b, b] = 1.0
    return m


def strongly_entangling_unitary(weights, n):
    """weights: (L, n, 3) -> 2^n x 2^n unitary (pennylane convention: wire 0 = MSB)."""
    L = weights.shape[0]
    U = np.eye(2 ** n, dtype=np.complex128)
    for l in range(L):
        layer = np.eye(2 ** n, dtype=np.complex128)
        for w in range(n):
            layer = _kron_single(_rot(*weights[l, w]), w, n) @ layer
        if n > 1:
            r = (l % (n - 1)) + 1
            for w in range(n):
                layer = _cnot(w, (w + r) % n, n) @ layer
        U = layer @ U
    return U


def build_constant_slab(ent_w_np, W_np, b_np):
    """Fold all data-independent math into one f32 slab (SLAB_ROWS, SLAB_COLS).

    Transposed convention (features x batch):
      psi  = diag(ph) @ mag           (ph = (-i)^popcount per basis state)
      out  = U @ psi = (U @ diag(ph)) @ mag = Vp @ mag
      y^T  = (W @ zsign^T) @ probs + b[:, None] = MT @ probs + bias_col
    """
    n, dim, A = STATE_SIZE, DIM, ACTION_SIZE
    U = strongly_entangling_unitary(ent_w_np, n)

    bits = np.array([[(b >> (n - 1 - w)) & 1 for b in range(dim)] for w in range(n)],
                    dtype=np.float64)                          # (n, dim)
    k4 = bits.sum(axis=0).astype(np.int64) % 4                 # popcount mod 4
    ph = (-1j) ** k4                                           # (-i)^popcount, (dim,)

    Vp = U * ph[None, :]                                       # U @ diag(ph), (dim, dim)
    MT = W_np @ (1.0 - 2.0 * bits)                             # (2A, dim)

    slab = np.zeros((SLAB_ROWS, SLAB_COLS), dtype=np.float32)
    slab[VRE_ROW:VRE_ROW + dim, :dim] = Vp.real
    slab[VIM_ROW:VIM_ROW + dim, :dim] = Vp.imag
    slab[MT_ROW:MT_ROW + 2 * A, :dim] = MT
    slab[BIAS_ROW:BIAS_ROW + 2 * A, 0] = b_np
    return slab


# ------------------------------ Pallas kernel --------------------------------
def actor_kernel(phi_t_ref, slab_ref, out_ref):
    n, dim, A = STATE_SIZE, DIM, ACTION_SIZE

    x = phi_t_ref[...]                        # (n, TB) input angles, batch on lanes
    c = jnp.cos(0.5 * x)
    s = jnp.sin(0.5 * x)

    slab = slab_ref[...]                      # (48, 16) constants (single load)
    vre = slab[VRE_ROW:VRE_ROW + dim, :]              # (dim, dim)
    vim = slab[VIM_ROW:VIM_ROW + dim, :]              # (dim, dim)
    mt = slab[MT_ROW:MT_ROW + 2 * A, :]               # (2A, dim)
    bias = slab[BIAS_ROW:BIAS_ROW + 2 * A, 0:1]       # (2A, 1)

    # |psi0> = prod_w RX(x_w) |0..0>; magnitude per basis state (dim, TB).
    # Basis-state bit masks are compile-time wiring -> generate from iota,
    # no slab rows and no dependency on the constant DMA.
    basis = jax.lax.broadcasted_iota(jnp.int32, (dim, 1), 0)   # (dim, 1)
    mag = None
    for w in range(n):                        # n is tiny & static
        bit = (basis >> (n - 1 - w)) & 1                       # (dim, 1)
        sel = jnp.where(bit == 1, s[w:w + 1, :], c[w:w + 1, :])  # (dim, TB)
        mag = sel if mag is None else mag * sel

    # phase-folded entangler: two lane-0-aligned real matmuls on the MXU
    out_re = jnp.dot(vre, mag, preferred_element_type=jnp.float32)  # (dim, TB)
    out_im = jnp.dot(vim, mag, preferred_element_type=jnp.float32)  # (dim, TB)
    probs = out_re * out_re + out_im * out_im                       # (dim, TB)

    # fused (Z-expectation @ Linear) matrix + bias, still transposed
    y = jnp.dot(mt, probs, preferred_element_type=jnp.float32) + bias  # (2A, TB)

    mean = y[0:A, :]                          # (A, TB)
    raw_std = y[A:2 * A, :]                   # (A, TB)

    def softplus(v):
        return jnp.maximum(v, 0.0) + jnp.log1p(jnp.exp(-jnp.abs(v)))

    std = jnp.clip(softplus(raw_std), 1e-6, 10.0)

    u = mean                                  # deterministic branch of forward()
    action = ACTION_LIM * jnp.tanh(u)

    # u == mean -> quadratic term of Normal.log_prob is identically zero
    log_pi = -jnp.sum(jnp.log(std), axis=0, keepdims=True) - A * _HALF_LOG_2PI
    corr = 2.0 * (_LOG2 - u - softplus(-2.0 * u))
    log_pi = jnp.clip(log_pi - jnp.sum(corr, axis=0, keepdims=True), -20.0, 20.0)

    # single lane-dense store: (8, TB) = [action | mean | std | log_pi | pad]
    packed = jnp.concatenate(
        [action, mean, std, log_pi, jnp.zeros_like(log_pi)], axis=0)
    out_ref[...] = packed


def actor_forward(phi, slab, *, tile_b=TILE_B):
    B, n = phi.shape
    A = ACTION_SIZE
    n_tiles = pl.cdiv(B, tile_b)
    B_pad = n_tiles * tile_b

    phi_t = jnp.transpose(phi).astype(jnp.float32)             # (n, B)
    if B_pad != B:
        phi_t = jnp.pad(phi_t, ((0, 0), (0, B_pad - B)))

    out = pl.pallas_call(
        actor_kernel,
        grid=(n_tiles,),
        in_specs=[pl.BlockSpec((n, tile_b), lambda i: (0, i)),
                  pl.BlockSpec(slab.shape, lambda i: (0, 0))],
        out_specs=pl.BlockSpec((OUT_ROWS, tile_b), lambda i: (0, i)),
        out_shape=jax.ShapeDtypeStruct((OUT_ROWS, B_pad), jnp.float32),
        compiler_params=pltpu.CompilerParams(
            dimension_semantics=("parallel",)),
    )(phi_t, slab)

    action = out[0:A, :B].T
    mean = out[A:2 * A, :B].T
    std = out[2 * A:3 * A, :B].T
    log_pi = out[3 * A, :B]
    return action, mean, std, log_pi


# ---------------------- dense NumPy reference (checking) --------------------
def reference_forward(phi_np, weights_np, W_np, b_np):
    n, dim = STATE_SIZE, DIM
    U = strongly_entangling_unitary(weights_np, n)
    B = phi_np.shape[0]
    exps = np.zeros((B, n))
    for bi in range(B):
        psi = np.zeros(dim, dtype=np.complex128)
        psi[0] = 1.0
        for w in range(n):
            th = phi_np[bi, w]
            rx = np.array([[np.cos(th / 2), -1j * np.sin(th / 2)],
                           [-1j * np.sin(th / 2), np.cos(th / 2)]])
            psi = _kron_single(rx, w, n) @ psi
        psi = U @ psi
        p = np.abs(psi) ** 2
        for w in range(n):
            signs = np.array([1.0 if ((b >> (n - 1 - w)) & 1) == 0 else -1.0
                              for b in range(dim)])
            exps[bi, w] = np.sum(p * signs)
    y = exps @ W_np.T + b_np
    mean = y[:, :ACTION_SIZE]
    raw = y[:, ACTION_SIZE:]
    std = np.clip(np.logaddexp(0.0, raw), 1e-6, 10.0)
    u = mean
    action = ACTION_LIM * np.tanh(u)
    logp = np.sum(-0.5 * ((u - mean) / std) ** 2 - np.log(std) - _HALF_LOG_2PI, axis=-1)
    corr = np.sum(2.0 * (_LOG2 - u - np.logaddexp(0.0, -2.0 * u)), axis=-1)
    log_pi = np.clip(logp - corr, -20.0, 20.0)
    return action, mean, std, log_pi


# ----------------------------------- main ------------------------------------
if __name__ == "__main__":
    key = jax.random.PRNGKey(0)
    k1, k2, k3 = jax.random.split(key, 3)

    phi = jax.random.normal(k1, (BATCH, STATE_SIZE), dtype=jnp.float32)

    # deterministic synthetic parameter init (shapes from the module __init__)
    ent_w = jax.random.uniform(k2, (QNN_LAYERS, STATE_SIZE, 3),
                               minval=0.0, maxval=2.0 * math.pi)       # TorchLayer init
    bound = math.sqrt(6.0 / STATE_SIZE)                                # kaiming_uniform_
    W = jax.random.uniform(k3, (2 * ACTION_SIZE, STATE_SIZE),
                           minval=-bound, maxval=bound) * LAST_W_SCALE
    bvec = jnp.zeros((2 * ACTION_SIZE,), dtype=jnp.float32)

    ent_w_np = np.asarray(ent_w, dtype=np.float64)
    W_np = np.asarray(W, dtype=np.float64)
    b_np = np.asarray(bvec, dtype=np.float64)

    slab_np = build_constant_slab(ent_w_np, W_np, b_np)
    slab = jnp.asarray(slab_np)

    action, mean, std, log_pi = actor_forward(phi, slab)
    jax.block_until_ready((action, mean, std, log_pi))

    ref = reference_forward(np.asarray(phi, dtype=np.float64), ent_w_np, W_np, b_np)
    for got, want in zip((action, mean, std, log_pi), ref):
        np.testing.assert_allclose(np.asarray(got), want, rtol=1e-2, atol=1e-3)

    print("KERNEL_OK")
</pallas_src>

<mosaic_0001>
module attributes {stable_mosaic.version = 11 : i64} {
  func.func @actor_kernel(%arg0: i32, %arg1: memref<4x256xf32, #tpu.memory_space<vmem>>, %arg2: memref<48x16xf32, #tpu.memory_space<vmem>>, %arg3: memref<8x256xf32, #tpu.memory_space<vmem>>) attributes {dimension_semantics = [#tpu.dimension_semantics<parallel>], iteration_bounds = array<i64: 2>, scalar_prefetch = 0 : i64, scratch_operands = 0 : i64, tpu.core_type = #tpu.core_type<tc>, window_params = [{transform_indices = @transform_0, window_bounds = array<i64: 4, 256>}, {pipeline_mode = #tpu.pipeline_mode<synchronous>, transform_indices = @transform_1, window_bounds = array<i64: 48, 16>}, {transform_indices = @transform_2, window_bounds = array<i64: 8, 256>}]} {
    %c0 = arith.constant 0 : index
    %c0_0 = arith.constant 0 : index
    %0 = vector.load %arg1[%c0, %c0_0] : memref<4x256xf32, #tpu.memory_space<vmem>>, vector<4x256xf32>
    %cst = arith.constant 5.000000e-01 : f32
    %1 = vector.broadcast %cst : f32 to vector<4x256xf32>
    %2 = arith.mulf %1, %0 : vector<4x256xf32>
    %3 = math.cos %2 : vector<4x256xf32>
    %cst_1 = arith.constant 5.000000e-01 : f32
    %4 = vector.broadcast %cst_1 : f32 to vector<4x256xf32>
    %5 = arith.mulf %4, %0 : vector<4x256xf32>
    %6 = math.sin %5 : vector<4x256xf32>
    %c0_2 = arith.constant 0 : index
    %c0_3 = arith.constant 0 : index
    %7 = vector.load %arg2[%c0_2, %c0_3] : memref<48x16xf32, #tpu.memory_space<vmem>>, vector<48x16xf32>
    %8 = vector.extract_strided_slice %7 {offsets = [0, 0], sizes = [16, 16], strides = [1, 1]} : vector<48x16xf32> to vector<16x16xf32>
    %9 = vector.extract_strided_slice %7 {offsets = [16, 0], sizes = [16, 16], strides = [1, 1]} : vector<48x16xf32> to vector<16x16xf32>
    %10 = vector.extract_strided_slice %7 {offsets = [32, 0], sizes = [4, 16], strides = [1, 1]} : vector<48x16xf32> to vector<4x16xf32>
    %11 = vector.extract_strided_slice %7 {offsets = [40, 0], sizes = [4, 1], strides = [1, 1]} : vector<48x16xf32> to vector<4x1xf32>
    %12 = tpu.iota {dimensions = array<i32: 0>} : vector<16x1xi32>
    %c3_i32 = arith.constant 3 : i32
    %13 = vector.broadcast %c3_i32 : i32 to vector<16x1xi32>
    %14 = arith.shrsi %12, %13 : vector<16x1xi32>
    %c1_i32 = arith.constant 1 : i32
    %15 = vector.broadcast %c1_i32 : i32 to vector<16x1xi32>
    %16 = arith.andi %14, %15 : vector<16x1xi32>
    %c1_i32_4 = arith.constant 1 : i32
    %17 = vector.broadcast %c1_i32_4 : i32 to vector<16x1xi32>
    %18 = arith.cmpi eq, %16, %17 : vector<16x1xi32>
    %19 = vector.extract_strided_slice %6 {offsets = [0, 0], sizes = [1, 256], strides = [1, 1]} : vector<4x256xf32> to vector<1x256xf32>
    %20 = vector.extract_strided_slice %3 {offsets = [0, 0], sizes = [1, 256], strides = [1, 1]} : vector<4x256xf32> to vector<1x256xf32>
    %21 = vector.shape_cast %18 : vector<16x1xi1> to vector<16x1xi1>
    %22 = vector.broadcast %21 : vector<16x1xi1> to vector<16x256xi1>
    %23 = vector.shape_cast %19 : vector<1x256xf32> to vector<1x256xf32>
    %24 = vector.broadcast %23 : vector<1x256xf32> to vector<16x256xf32>
    %25 = vector.shape_cast %20 : vector<1x256xf32> to vector<1x256xf32>
    %26 = vector.broadcast %25 : vector<1x256xf32> to vector<16x256xf32>
    %27 = arith.select %22, %24, %26 : vector<16x256xi1>, vector<16x256xf32>
    %c2_i32 = arith.constant 2 : i32
    %28 = vector.broadcast %c2_i32 : i32 to vector<16x1xi32>
    %29 = arith.shrsi %12, %28 : vector<16x1xi32>
    %c1_i32_5 = arith.constant 1 : i32
    %30 = vector.broadcast %c1_i32_5 : i32 to vector<16x1xi32>
    %31 = arith.andi %29, %30 : vector<16x1xi32>
    %c1_i32_6 = arith.constant 1 : i32
    %32 = vector.broadcast %c1_i32_6 : i32 to vector<16x1xi32>
    %33 = arith.cmpi eq, %31, %32 : vector<16x1xi32>
    %34 = vector.extract_strided_slice %6 {offsets = [1, 0], sizes = [1, 256], strides = [1, 1]} : vector<4x256xf32> to vector<1x256xf32>
    %35 = vector.extract_strided_slice %3 {offsets = [1, 0], sizes = [1, 256], strides = [1, 1]} : vector<4x256xf32> to vector<1x256xf32>
    %36 = vector.shape_cast %33 : vector<16x1xi1> to vector<16x1xi1>
    %37 = vector.broadcast %36 : vector<16x1xi1> to vector<16x256xi1>
    %38 = vector.shape_cast %34 : vector<1x256xf32> to vector<1x256xf32>
    %39 = vector.broadcast %38 : vector<1x256xf32> to vector<16x256xf32>
    %40 = vector.shape_cast %35 : vector<1x256xf32> to vector<1x256xf32>
    %41 = vector.broadcast %40 : vector<1x256xf32> to vector<16x256xf32>
    %42 = arith.select %37, %39, %41 : vector<16x256xi1>, vector<16x256xf32>
    %43 = arith.mulf %27, %42 : vector<16x256xf32>
    %c1_i32_7 = arith.constant 1 : i32
    %44 = vector.broadcast %c1_i32_7 : i32 to vector<16x1xi32>
    %45 = arith.shrsi %12, %44 : vector<16x1xi32>
    %c1_i32_8 = arith.constant 1 : i32
    %46 = vector.broadcast %c1_i32_8 : i32 to vector<16x1xi32>
    %47 = arith.andi %45, %46 : vector<16x1xi32>
    %c1_i32_9 = arith.constant 1 : i32
    %48 = vector.broadcast %c1_i32_9 : i32 to vector<16x1xi32>
    %49 = arith.cmpi eq, %47, %48 : vector<16x1xi32>
    %50 = vector.extract_strided_slice %6 {offsets = [2, 0], sizes = [1, 256], strides = [1, 1]} : vector<4x256xf32> to vector<1x256xf32>
    %51 = vector.extract_strided_slice %3 {offsets = [2, 0], sizes = [1, 256], strides = [1, 1]} : vector<4x256xf32> to vector<1x256xf32>
    %52 = vector.shape_cast %49 : vector<16x1xi1> to vector<16x1xi1>
    %53 = vector.broadcast %52 : vector<16x1xi1> to vector<16x256xi1>
    %54 = vector.shape_cast %50 : vector<1x256xf32> to vector<1x256xf32>
    %55 = vector.broadcast %54 : vector<1x256xf32> to vector<16x256xf32>
    %56 = vector.shape_cast %51 : vector<1x256xf32> to vector<1x256xf32>
    %57 = vector.broadcast %56 : vector<1x256xf32> to vector<16x256xf32>
    %58 = arith.select %53, %55, %57 : vector<16x256xi1>, vector<16x256xf32>
    %59 = arith.mulf %43, %58 : vector<16x256xf32>
    %c0_i32 = arith.constant 0 : i32
    %60 = vector.broadcast %c0_i32 : i32 to vector<16x1xi32>
    %61 = arith.shrsi %12, %60 : vector<16x1xi32>
    %c1_i32_10 = arith.constant 1 : i32
    %62 = vector.broadcast %c1_i32_10 : i32 to vector<16x1xi32>
    %63 = arith.andi %61, %62 : vector<16x1xi32>
    %c1_i32_11 = arith.constant 1 : i32
    %64 = vector.broadcast %c1_i32_11 : i32 to vector<16x1xi32>
    %65 = arith.cmpi eq, %63, %64 : vector<16x1xi32>
    %66 = vector.extract_strided_slice %6 {offsets = [3, 0], sizes = [1, 256], strides = [1, 1]} : vector<4x256xf32> to vector<1x256xf32>
    %67 = vector.extract_strided_slice %3 {offsets = [3, 0], sizes = [1, 256], strides = [1, 1]} : vector<4x256xf32> to vector<1x256xf32>
    %68 = vector.shape_cast %65 : vector<16x1xi1> to vector<16x1xi1>
    %69 = vector.broadcast %68 : vector<16x1xi1> to vector<16x256xi1>
    %70 = vector.shape_cast %66 : vector<1x256xf32> to vector<1x256xf32>
    %71 = vector.broadcast %70 : vector<1x256xf32> to vector<16x256xf32>
    %72 = vector.shape_cast %67 : vector<1x256xf32> to vector<1x256xf32>
    %73 = vector.broadcast %72 : vector<1x256xf32> to vector<16x256xf32>
    %74 = arith.select %69, %71, %73 : vector<16x256xi1>, vector<16x256xf32>
    %75 = arith.mulf %59, %74 : vector<16x256xf32>
    %cst_12 = arith.constant dense<0.000000e+00> : vector<16x256xf32>
    %76 = tpu.matmul %8, %75, %cst_12 {dimension_numbers = #tpu.dot_dimension_numbers<[1], [0], [0], [1], [0, 0, 1, 1], [], []>} : vector<16x16xf32>, vector<16x256xf32>, vector<16x256xf32> -> vector<16x256xf32>
    %cst_13 = arith.constant dense<0.000000e+00> : vector<16x256xf32>
    %77 = tpu.matmul %9, %75, %cst_13 {dimension_numbers = #tpu.dot_dimension_numbers<[1], [0], [0], [1], [0, 0, 1, 1], [], []>} : vector<16x16xf32>, vector<16x256xf32>, vector<16x256xf32> -> vector<16x256xf32>
    %78 = arith.mulf %76, %76 : vector<16x256xf32>
    %79 = arith.mulf %77, %77 : vector<16x256xf32>
    %80 = arith.addf %78, %79 : vector<16x256xf32>
    %cst_14 = arith.constant dense<0.000000e+00> : vector<4x256xf32>
    %81 = tpu.matmul %10, %80, %cst_14 {dimension_numbers = #tpu.dot_dimension_numbers<[1], [0], [0], [1], [0, 0, 1, 1], [], []>} : vector<4x16xf32>, vector<16x256xf32>, vector<4x256xf32> -> vector<4x256xf32>
    %82 = vector.broadcast %11 : vector<4x1xf32> to vector<4x256xf32>
    %83 = arith.addf %81, %82 : vector<4x256xf32>
    %84 = vector.extract_strided_slice %83 {offsets = [0, 0], sizes = [2, 256], strides = [1, 1]} : vector<4x256xf32> to vector<2x256xf32>
    %85 = vector.extract_strided_slice %83 {offsets = [2, 0], sizes = [2, 256], strides = [1, 1]} : vector<4x256xf32> to vector<2x256xf32>
    %cst_15 = arith.constant 0.000000e+00 : f32
    %86 = vector.broadcast %cst_15 : f32 to vector<2x256xf32>
    %87 = arith.maximumf %85, %86 : vector<2x256xf32>
    %88 = math.absf %85 : vector<2x256xf32>
    %cst_16 = arith.constant 0.000000e+00 : f32
    %89 = vector.broadcast %cst_16 : f32 to vector<2x256xf32>
    %90 = arith.subf %89, %88 : vector<2x256xf32>
    %91 = math.exp %90 : vector<2x256xf32>
    %92 = math.log1p %91 : vector<2x256xf32>
    %93 = arith.addf %87, %92 : vector<2x256xf32>
    %cst_17 = arith.constant 9.99999997E-7 : f32
    %cst_18 = arith.constant 1.000000e+01 : f32
    %94 = vector.broadcast %cst_17 : f32 to vector<2x256xf32>
    %95 = arith.maximumf %94, %93 : vector<2x256xf32>
    %96 = vector.broadcast %cst_18 : f32 to vector<2x256xf32>
    %97 = arith.minimumf %96, %95 : vector<2x256xf32>
    %98 = math.tanh %84 : vector<2x256xf32>
    %cst_19 = arith.constant 1.000000e+00 : f32
    %99 = vector.broadcast %cst_19 : f32 to vector<2x256xf32>
    %100 = arith.mulf %99, %98 : vector<2x256xf32>
    %101 = math.log %97 : vector<2x256xf32>
    %cst_20 = arith.constant dense<0.000000e+00> : vector<256xf32>
    %102 = vector.multi_reduction <add>, %101, %cst_20 [0] : vector<2x256xf32> to vector<256xf32>
    %103 = vector.shape_cast %102 : vector<256xf32> to vector<1x256xf32>
    %cst_21 = arith.constant 0.000000e+00 : f32
    %104 = vector.broadcast %cst_21 : f32 to vector<1x256xf32>
    %105 = arith.subf %104, %103 : vector<1x256xf32>
    %cst_22 = arith.constant 1.83787704 : f32
    %106 = vector.broadcast %cst_22 : f32 to vector<1x256xf32>
    %107 = arith.subf %105, %106 : vector<1x256xf32>
    %cst_23 = arith.constant 0.693147182 : f32
    %108 = vector.broadcast %cst_23 : f32 to vector<2x256xf32>
    %109 = arith.subf %108, %84 : vector<2x256xf32>
    %cst_24 = arith.constant -2.000000e+00 : f32
    %110 = vector.broadcast %cst_24 : f32 to vector<2x256xf32>
    %111 = arith.mulf %110, %84 : vector<2x256xf32>
    %cst_25 = arith.constant 0.000000e+00 : f32
    %112 = vector.broadcast %cst_25 : f32 to vector<2x256xf32>
    %113 = arith.maximumf %111, %112 : vector<2x256xf32>
    %114 = math.absf %111 : vector<2x256xf32>
    %cst_26 = arith.constant 0.000000e+00 : f32
    %115 = vector.broadcast %cst_26 : f32 to vector<2x256xf32>
    %116 = arith.subf %115, %114 : vector<2x256xf32>
    %117 = math.exp %116 : vector<2x256xf32>
    %118 = math.log1p %117 : vector<2x256xf32>
    %119 = arith.addf %113, %118 : vector<2x256xf32>
    %120 = arith.subf %109, %119 : vector<2x256xf32>
    %cst_27 = arith.constant 2.000000e+00 : f32
    %121 = vector.broadcast %cst_27 : f32 to vector<2x256xf32>
    %122 = arith.mulf %121, %120 : vector<2x256xf32>
    %cst_28 = arith.constant dense<0.000000e+00> : vector<256xf32>
    %123 = vector.multi_reduction <add>, %122, %cst_28 [0] : vector<2x256xf32> to vector<256xf32>
    %124 = vector.shape_cast %123 : vector<256xf32> to vector<1x256xf32>
    %125 = arith.subf %107, %124 : vector<1x256xf32>
    %cst_29 = arith.constant -2.000000e+01 : f32
    %cst_30 = arith.constant 2.000000e+01 : f32
    %126 = vector.broadcast %cst_29 : f32 to vector<1x256xf32>
    %127 = arith.maximumf %126, %125 : vector<1x256xf32>
    %128 = vector.broadcast %cst_30 : f32 to vector<1x256xf32>
    %129 = arith.minimumf %128, %127 : vector<1x256xf32>
    %cst_31 = arith.constant 0.000000e+00 : f32
    %130 = vector.broadcast %cst_31 : f32 to vector<1x256xf32>
    %131 = tpu.concatenate %100, %84, %97, %129, %130 in 0 : vector<2x256xf32>, vector<2x256xf32>, vector<2x256xf32>, vector<1x256xf32>, vector<1x256xf32> -> vector<8x256xf32>
    %c0_32 = arith.constant 0 : index
    %c0_33 = arith.constant 0 : index
    %132 = vector.load %arg3[%c0_32, %c0_33] : memref<8x256xf32, #tpu.memory_space<vmem>>, vector<8x256xf32>
    tpu.vector_store %arg3[%c0_32, %c0_33], %131 {strides = array<i32>} : memref<8x256xf32, #tpu.memory_space<vmem>>, vector<8x256xf32>,
    return
  }
  func.func @transform_0(%arg0: i32) -> (i32, i32) {
    %c0_i32 = arith.constant 0 : i32
    %c0_i32_0 = arith.constant 0 : i32
    return %c0_i32, %arg0 : i32, i32
  }
  func.func @transform_1(%arg0: i32) -> (i32, i32) {
    %c0_i32 = arith.constant 0 : i32
    %c0_i32_0 = arith.constant 0 : i32
    %c0_i32_1 = arith.constant 0 : i32
    return %c0_i32, %c0_i32_0 : i32, i32
  }
  func.func @transform_2(%arg0: i32) -> (i32, i32) {
    %c0_i32 = arith.constant 0 : i32
    %c0_i32_0 = arith.constant 0 : i32
    return %c0_i32, %arg0 : i32, i32
  }
}

</mosaic_0001>

<bundles_post_ra>
// kernel: tpu_custom_call.1
= control target key start
LH: loop header
LB: loop body
LE: loop exit
PB: predicated region body
PF: predicated region fallthrough
CT: control target
= control target key end

     0   :  { %7 = vsyncpa [#allocation3], 0  ;;  %s1433_s0 = inlined_call_operand.vmem [shape: f32[4,512], index: 0, kind: input, shape index: {}]   ;;  %s1434_s1 = inlined_call_operand.vmem [shape: f32[48,16], index: 1, kind: input, shape index: {}]   ;;  %s1435_s2 = inlined_call_operand.hbm [shape: f32[8,512], index: 2, kind: output, shape index: {}]  }
   0x1   :  { %9 = vsyncpa [#allocation3 + $0x1], 0  ;;  %s1160_s9 = smov 0   ;;  %s1162_s10 = smov 0  }
   0x2   :  { %s1164_s11 = smov 0   ;;  %s1166_s12 = smov 0  }
   0x3 LB: > { %s1181_s13 = sadd.s32 4294967295, %s1136_s12   ;;  %s970_s14 = sadd.s32 4294967294, %s1136_s12   ;;  %s1136_s12 = sphi %s1166_s12, %s1445_s12   ;;  %s1132_s11 = sphi %s1164_s11, %s1444_s11   ;;  %s1128_s10 = sphi %s1162_s10, %s1443_s10   ;;  %s1124_s9 = sphi %s1160_s9, %s1442_s9  }
   0x4   : > { %s1185_s15 = sadd.s32 1, %s1136_s12   ;;  %s69_s16 = sadd.s32 1, %s1132_s11 }
   0x5   : > { %s66_s17 = ssub.s32 %s1136_s12, %s1185_s15  ;;  %p79_p0 = scmp.ne.s32.totalorder %s1132_s11, %s1128_s10 }
   0x6   : > { %p67_p1 = scmp.eq.s32.totalorder %s66_s17, 0  ;;  %p80_p2 = scmp.eq.s32.totalorder %s1181_s13, 1 }
   0x7   : > { %p85_p3 = scmp.ne.s32.totalorder %s1128_s10, %s1124_s9  ;;  %p86_p4 = scmp.eq.s32.totalorder %s970_s14, 1 }
   0x8   : > { %s1196_s18 = scalar_select %p67_p1, %s1132_s11, %s69_s16  }
   0x9   : > { %p1198_p5 = por %p80_p2, %p79_p0  ;;  %p1202_p6 = por %p86_p4, %p85_p3 }
   0xa   : > { %p973_p7 = scmp.ge.s32.totalorder %s1136_s12, 1  ;;  %p116_p8 = scmp.lt.s32.totalorder %s1136_s12, 3 }
   0xc   : > { %p117_p9 = pnand %p973_p7, %p116_p8 }
   0xd   : > { %s975_s21 = sshll.u32 (!%p117_p9), %s1181_s13, 1  ;;  %s135_s16 = sand.u32 (!%p117_p9), 1, %s1128_s10  }
   0xe   : > { %120 = sbr.rel (%p117_p9) target bundleno = 485 (0x1e5), region = 28  ;;  %p139_p10 = scmp.lt.s32.totalorder (!%p117_p9), %s975_s21, 3 }
   0xf   : > { %s974_s17 = sshll.u32 (!%p117_p9), %s135_s16, 4  ;;  %s895_s27 = scalar_lea.sflag (!%p117_p9), [#allocation3], %s135_s16 }
  0x10   : > { %s1094_s4 = scalar_lea.hbm (!%p117_p9), %s1435_s2, 32 }
  0x13   : > { %s1447_s21 = smov (!%p139_p10, %s975_s21), 3  ;;  %v1138_v1 = vmov 0   ;;  %v1139_v14 = vmov 683565275   ;;  %v1140_v16 = vmov 2475754826  }
  0x14   : > { %s976_s22 = sshll.u32 %s1447_s21, 2  ;;  %1049 = vset.pattern.permute.xlu0 %v1138_v1  ;;  %v1141_v18 = vmov 2131351028   ;;  %v1142_v20 = vmov 2102212464   ;;  %s1002_s21 = sshll.u32 %s1181_s13, 4 }
  0x15   : > { %s142_s25 = scalar_lea.vmem %s1433_s0, %s976_s22  ;;  %v1143_v22 = vmov 920167782   ;;  %v1144_v28 = vmov 1326507024   ;;  %s906_s24 = scalar_lea.hbm %s1435_s2, %s1002_s21 }
  0x16   : > { %v145_v0 = vld [vmem:[%s142_s25] sm:$0xff]  ;;  %s137_s13 = scalar_lea.vmem [#allocation2], %s974_s17  ;;  %s910_s26 = sshll.u32 %s906_s24, 4  ;;  %s911_s26 = int_to_ptr.hbm [resolvable:$true] %s910_s26 }
  0x17   : > { %v1213_v2 = vmul.f32 0.5, %v145_v0  ;;  %s908_s25 = sshll.u32 %s137_s13, 4  ;;  %s1088_s28 = sshra.s32 %s911_s26, 4  ;;  %s909_s25 = int_to_ptr.vmem [resolvable:$true] %s908_s25  ;;  %s1089_s28 = int_to_ptr.hbm [resolvable:$true] %s1088_s28 }
  0x18   : > { %s1090_s29 = scalar_lea.hbm %s1089_s28, 16  ;;  %p1095_p0 = scmp.lt.s32.totalorder %s1089_s28, %s1435_s2 }
  0x19   : > { %v150_v3 = vand.u32 2139095040, %v1213_v2  ;;  %v147_v5 = vand.u32 2147483647, %v1213_v2  ;;  %vm149_vm12 = vcmp.lt.s32.totalorder %v1213_v2, 0  ;;  %p1091_p11 = scmp.ne.s32.totalorder %s1089_s28, %s1090_s29  ;;  %p1096_p1 = scmp.lt.s32.totalorder %s1094_s4, %s1090_s29 }
  0x1b   : > { %v151_v4 = vshrl.u32 %v150_v3, 23  ;;  %v154_v8 = vand.u32 8388607, %v147_v5  ;;  %vm148_vm13 = vcmp.le.f32.partialorder %v147_v5, 0.7853982  ;;  %p1092_p12 = pnand %p1091_p11, %p1198_p5  ;;  %p1097_p2 = por %p1096_p1, %p1095_p0 }
  0x1d   : > { %v977_v6 = vadd.s32 4294967169, %v151_v4  ;;  %v155_v11 = vor.u32 8388608, %v154_v8  ;;  %p1093_p13 = pneg %p1092_p12 }
  0x1f   : > { %v157_v7 = vadd.s32 1, %v977_v6  ;;  %v1222_v30 = vshll.u32 %v155_v11, 8  ;;  %p1098_p3 = pnand %p1097_p2, %p1093_p13 }
  0x21   : > { %vm158_vm0 = vcmp.gt.s32.totalorder %v157_v7, 0  ;;  %v196_v42 = vand.u32 65535, %v1222_v30  ;;  %v197_v43 = vshrl.u32 %v1222_v30, 16 }
  0x22   : > { %v159_v9 = vsel %vm158_vm0, %v157_v7, 0 }
  0x23   : > { %v161_v10 = vand.u32 31, %v159_v9  ;;  %v1219_v12 = vshrl.u32 %v159_v9, 5 }
  0x25   : > { %v162_v13 = vsub.s32 32, %v161_v10  ;;  %v164_v15 = vshll.u32 %v1139_v14, %v161_v10  ;;  %v167_v17 = vshll.u32 %v1140_v16, %v161_v10  ;;  %v170_v19 = vshll.u32 %v1141_v18, %v161_v10 }
  0x26   : > { %v173_v21 = vshll.u32 %v1142_v20, %v161_v10  ;;  %v176_v23 = vshll.u32 %v1143_v22, %v161_v10  ;;  %vm179_vm1 = vcmp.lt.s32.totalorder %v1219_v12, 1  ;;  %vm182_vm2 = vcmp.lt.s32.totalorder %v1219_v12, 4 }
  0x27   : > { %v165_v24 = vshrl.u32 %v1140_v16, %v162_v13  ;;  %v168_v25 = vshrl.u32 %v1141_v18, %v162_v13  ;;  %v171_v26 = vshrl.u32 %v1142_v20, %v162_v13  ;;  %v174_v27 = vshrl.u32 %v1143_v22, %v162_v13 }
  0x28   : > { %v177_v29 = vshrl.u32 %v1144_v28, %v162_v13  ;;  %vm181_vm3 = vcmp.lt.s32.totalorder %v1219_v12, 3  ;;  %vm180_vm4 = vcmp.lt.s32.totalorder %v1219_v12, 2  ;;  %v163_v50 = vshrl.u32 %v1139_v14, %v162_v13 }
  0x29   : > { %v166_v31 = vor.u32 %v165_v24, %v164_v15  ;;  %v169_v32 = vor.u32 %v168_v25, %v167_v17  ;;  %v172_v33 = vor.u32 %v171_v26, %v170_v19  ;;  %v175_v34 = vor.u32 %v174_v27, %v173_v21 }
  0x2a   : > { %v178_v35 = vor.u32 %v177_v29, %v176_v23 }
  0x2b   : > { %v187_v36 = vsel %vm179_vm1, %v166_v31, %v169_v32  ;;  %v191_v37 = vsel %vm179_vm1, %v169_v32, %v172_v33  ;;  %v188_v38 = vsel %vm182_vm2, %v175_v34, 920167782  ;;  %v183_v63 = vsel %vm179_vm1, %v163_v50, %v166_v31 }
  0x2c   : > { %v192_v39 = vsel %vm182_vm2, %v178_v35, 1326507024  ;;  %v189_v40 = vsel %vm181_vm3, %v172_v33, %v188_v38  ;;  %v184_v3 = vsel %vm182_vm2, %v172_v33, 2102212464 }
  0x2d   : > { %v193_v41 = vsel %vm181_vm3, %v175_v34, %v192_v39  ;;  %v190_v44 = vsel %vm180_vm4, %v187_v36, %v189_v40  ;;  %v185_v14 = vsel %vm181_vm3, %v169_v32, %v184_v3 }
  0x2e   : > { %v194_v45 = vsel %vm180_vm4, %v191_v37, %v193_v41  ;;  %v220_v48 = vand.u32 65535, %v190_v44  ;;  %v221_v49 = vshrl.u32 %v190_v44, 16  ;;  %v186_v22 = vsel %vm180_vm4, %v183_v63, %v185_v14 }
  0x2f   : > { %v198_v46 = vand.u32 65535, %v194_v45  ;;  %v199_v47 = vshrl.u32 %v194_v45, 16  ;;  %v240_v26 = vmul.u32 %v1222_v30, %v186_v22  ;;  %vm290_vm4 = vweird.f32 %v1213_v2 }
  0x30   : > { %v222_v54 = vmul.u32 %v220_v48, %v196_v42  ;;  %v223_v55 = vmul.u32 %v221_v49, %v196_v42  ;;  %v224_v56 = vmul.u32 %v220_v48, %v197_v43  ;;  %v225_v60 = vmul.u32 %v221_v49, %v197_v43 }
  0x31   : > { %v200_v51 = vmul.u32 %v198_v46, %v196_v42  ;;  %v201_v52 = vmul.u32 %v199_v47, %v196_v42  ;;  %v202_v53 = vmul.u32 %v198_v46, %v197_v43  ;;  %v203_v57 = vmul.u32 %v199_v47, %v197_v43 }
  0x32   : > { %v226_v61 = vshll.u32 %v223_v55, 16  ;;  %v228_v62 = vshll.u32 %v224_v56, 16  ;;  %v227_v11 = vshrl.u32 %v223_v55, 16  ;;  %v229_v18 = vshrl.u32 %v224_v56, 16 }
  0x33   : > { %v204_v58 = vshll.u32 %v201_v52, 16  ;;  %v206_v59 = vshll.u32 %v202_v53, 16  ;;  %v205_v7 = vshrl.u32 %v201_v52, 16  ;;  %v207_v15 = vshrl.u32 %v202_v53, 16 }
  0x34   : > { %vm230_vm6 = vc.u32 %v222_v54, %v226_v61  ;;  %v232_v6 = vadd.s32 %v226_v61, %v222_v54 }
  0x35   : > { %vm208_vm5 = vc.u32 %v200_v51, %v204_v58  ;;  %v210_v0 = vadd.s32 %v204_v58, %v200_v51  ;;  %v231_v9 = vsel %vm230_vm6, 1, %v1138_v1  ;;  %v462_v51 = vlaneseq }
  0x36   : > { %v209_v4 = vsel %vm208_vm5, 1, %v1138_v1  ;;  %v233_v13 = vadd.s32 %v231_v9, %v225_v60  ;;  %vm234_vm8 = vc.u32 %v232_v6, %v228_v62  ;;  %v236_v21 = vadd.s32 %v232_v6, %v228_v62 }
  0x37   : > { %v211_v8 = vadd.s32 %v209_v4, %v203_v57  ;;  %vm212_vm7 = vc.u32 %v210_v0, %v206_v59  ;;  %v235_v17 = vsel %vm234_vm8, 1, %v1138_v1  ;;  %v463_v56 = vshrl.u32 %v462_v51, 7 }
  0x38   : > { %v213_v10 = vsel %vm212_vm7, 1, %v1138_v1  ;;  %v237_v19 = vadd.s32 %v235_v17, %v233_v13 }
  0x39   : > { %v215_v16 = vadd.s32 %v213_v10, %v211_v8  ;;  %v464_v63 = vadd.s32 8, %v463_v56  ;;  %v465_v14 = vshra.s32 %v463_v56, 3 }
  0x3a   : > { %v238_v23 = vadd.s32 %v237_v19, %v227_v11 }
  0x3b   : > { %v216_v20 = vadd.s32 %v215_v16, %v205_v7  ;;  %v466_v8 = vshra.s32 %v464_v63, 3  ;;  %v494_v11 = vshra.s32 %v464_v63, 2  ;;  %v524_v13 = vshra.s32 %v464_v63, 1 }
  0x3c   : > { %v239_v25 = vadd.s32 %v238_v23, %v229_v18  ;;  %v523_v18 = vshra.s32 %v463_v56, 1 }
  0x3d   : > { %v217_v24 = vadd.s32 %v216_v20, %v207_v15  ;;  %v493_v15 = vshra.s32 %v463_v56, 2  ;;  %v1262_v19 = vand.u32 1, %v466_v8  ;;  %v1264_v22 = vand.u32 1, %v494_v11 }
  0x3e   : > { %v243_v27 = vadd.s32 1, %v239_v25  ;;  %v1266_v23 = vand.u32 1, %v524_v13 }
  0x3f   : > { %vm242_vm9 = vc.u32 %v217_v24, %v236_v21  ;;  %v241_v12 = vadd.s32 %v236_v21, %v217_v24  ;;  %v554_v24 = vand.u32 1, %v464_v63  ;;  %vm470_vm5 = vcmp.eq.s32.totalorder %v1262_v19, 1 }
  0x40   : > { %v244_v28 = vsel %vm242_vm9, %v243_v27, %v239_v25  ;;  %v1268_v25 = vand.u32 1, %v465_v14  ;;  %vm498_vm6 = vcmp.eq.s32.totalorder %v1264_v22, 1  ;;  %vm528_vm7 = vcmp.eq.s32.totalorder %v1266_v23, 1 }
  0x41   : > { %v245_v29 = vadd.s32 %v244_v28, %v240_v26  ;;  %v1270_v26 = vand.u32 1, %v493_v15  ;;  %vm1282_vm8 = vcmp.eq.s32.totalorder %v554_v24, 1 }
  0x42   : > { %vm469_vm9 = vcmp.eq.s32.totalorder %v1268_v25, 1  ;;  %v458_v25 = vld [vmem:[%s1434_s1 + $0x10] sm:$0xff] }
  0x43   : > { %v246_v31 = vadd.s32 536870912, %v245_v29 }
  0x45   : > { %v247_v32 = vshrl.u32 %v246_v31, 30  ;;  %v1272_v31 = vand.u32 1, %v523_v18 }
  0x47   : > { %v248_v33 = vshll.u32 %v247_v32, 30  ;;  %v271_v49 = vsub.s32 4, %v247_v32 }
  0x49   : > { %v249_v1 = vsub.s32 %v245_v29, %v248_v33  ;;  %v272_v53 = vsel %vm149_vm12, %v271_v49, %v247_v32  ;;  %v553_v32 = vand.u32 1, %v463_v56 }
  0x4a   : > { %v274_v57 = vsel %vm148_vm13, 0, %v272_v53 }
  0x4b   : > { %vm250_vm10 = vcmp.lt.s32.totalorder %v249_v1, 0  ;;  %v251_v34 = vsub.s32 0, %v249_v1  ;;  %v445_v62 = vadd.s32 3, %v274_v57  ;;  %v291_v4 = vand.u32 3, %v274_v57 }
  0x4d   : > { %v252_v35 = vsel %vm250_vm10, %v251_v34, %v249_v1  ;;  %v446_v7 = vand.u32 3, %v445_v62  ;;  %vm292_vm14 = vcmp.lt.s32.totalorder %v291_v4, 2  ;;  %vm293_vm15 = vcmp.eq.s32.totalorder %v291_v4, 0 }
  0x4e   : > { %v253_v36 = vclz %v252_v35  ;;  %vm296_vm0 = vcmp.eq.s32.totalorder %v291_v4, 2  ;;  %vm497_vm10 = vcmp.eq.s32.totalorder %v1270_v26, 1 }
  0x4f   : > { %vm448_vm1 = vcmp.eq.s32.totalorder %v446_v7, 0  ;;  %vm451_vm2 = vcmp.eq.s32.totalorder %v446_v7, 2  ;;  %vm447_vm3 = vcmp.lt.s32.totalorder %v446_v7, 2 }
  0x50   : > { %v978_v37 = vadd.s32 4294967294, %v253_v36 }
  0x52   : > { %vm979_vm11 = vcmp.lt.s32.totalorder %v978_v37, 0 }
  0x53   : > { %v256_v38 = vsel %vm979_vm11, 0, %v978_v37  ;;  %vm527_vm11 = vcmp.eq.s32.totalorder %v1272_v31, 1  ;;  %v456_v31 = vld [vmem:[%s1434_s1] sm:$0xff] }
  0x54   : > { %v257_v39 = vsub.s32 32, %v256_v38  ;;  %v258_v40 = vshll.u32 %v249_v1, %v256_v38  ;;  %v261_v41 = vsub.s32 4294967266, %v256_v38 }
  0x56   : > { %v259_v30 = vshrl.u32 %v241_v12, %v257_v39  ;;  %v262_v42 = vadd.s32 127, %v261_v41 }
  0x58   : > { %v260_v43 = vor.u32 %v259_v30, %v258_v40  ;;  %v263_v44 = vshll.u32 %v262_v42, 23 }
  0x5a   : > { %v264_v45 = vor.u32 4788187, %v263_v44  ;;  %v267_v46 = vcvt.s32.f32 %v260_v43 }
  0x5c   : > { %v265_v47 = vand.u32 2147483647, %v264_v45 }
  0x5e   : > { %v268_v48 = vmul.f32 %v267_v46, %v265_v47 }
  0x60   : > { %v269_v50 = vxor.u32 2147483648, %v268_v48 }
  0x62   : > { %v270_v52 = vsel %vm149_vm12, %v269_v50, %v268_v48  ;;  %vm1289_vm12 = vcmp.eq.s32.totalorder %v553_v32, 1 }
  0x63   : > { %v273_v54 = vsel %vm148_vm13, %v1213_v2, %v270_v52  ;;  %vm581_vm13 = vcmask 130048  }
  0x64   : > { %v275_v55 = vmul.f32 %v273_v54, %v273_v54 }
  0x66   : > { %v276_v58 = vmul.f32 -0.001358992, %v275_v55  ;;  %v283_v59 = vmul.f32 -0.00019511016, %v275_v55 }
  0x68   : > { %v277_v60 = vadd.f32 0.041655596, %v276_v58  ;;  %v284_v61 = vadd.f32 0.008332121, %v283_v59 }
  0x6a   : > { %v278_v0 = vmul.f32 %v277_v60, %v275_v55  ;;  %v285_v3 = vmul.f32 %v284_v61, %v275_v55 }
  0x6c   : > { %v279_v6 = vadd.f32 -0.4999988, %v278_v0  ;;  %v286_v5 = vadd.f32 -0.16666654, %v285_v3 }
  0x6e   : > { %v280_v9 = vmul.f32 %v279_v6, %v275_v55  ;;  %v287_v10 = vmul.f32 %v286_v5, %v275_v55 }
  0x70   : > { %v281_v16 = vadd.f32 1.0, %v280_v9  ;;  %v288_v17 = vadd.f32 1.0, %v287_v10 }
  0x72   : > { %v289_v20 = vmul.f32 %v288_v17, %v273_v54  ;;  %v297_v21 = vxor.u32 2147483648, %v281_v16 }
  0x74   : > { %v294_v27 = vxor.u32 2147483648, %v289_v20  ;;  %v298_v28 = vsel %vm296_vm0, %v297_v21, %v289_v20  ;;  %v453_v29 = vsel %vm451_vm2, %v297_v21, %v289_v20  ;;  %vm792_vm2 = vcmask 1041408  }
  0x76   : > { %v295_v33 = vsel %vm293_vm15, %v281_v16, %v294_v27  ;;  %v450_v1 = vsel %vm448_vm1, %v281_v16, %v294_v27 }
  0x77   : > { %v299_v34 = vsel %vm292_vm14, %v295_v33, %v298_v28  ;;  %v454_v35 = vsel %vm447_vm3, %v450_v1, %v453_v29  ;;  %vm883_vm3 = vcmask 1043456  }
  0x78   : > { %v300_v2 = vsel %vm290_vm4, nan, %v299_v34  ;;  %v455_v37 = vsel %vm290_vm4, nan, %v454_v35  ;;  %vm886_vm4 = vcmask 1045504  }
  0x79   : > { %v476_v12 = vperm.slane %v455_v37, 0  ;;  %v483_v38 = vperm.slane %v300_v2, 0  ;;  %v503_v39 = vperm.slane %v455_v37, 1  ;;  %v509_v40 = vperm.slane %v300_v2, 1 }
  0x7a   : > { %v533_v30 = vperm.slane %v455_v37, 2  ;;  %v539_v42 = vperm.slane %v300_v2, 2  ;;  %v561_v43 = vperm.slane %v455_v37, 3  ;;  %v567_v44 = vperm.slane %v300_v2, 3 }
  0x7b   : > { %v480_v45 = vperm.slane %v476_v12, 0  ;;  %v487_v46 = vperm.slane %v483_v38, 0  ;;  %v507_v47 = vperm.slane %v503_v39, 1  ;;  %v513_v48 = vperm.slane %v509_v40, 1  ;;  %v457_v12 = vld [vmem:[%s1434_s1 + $0x8] sm:$0xff] }
  0x7c   : > { %v537_v49 = vperm.slane %v533_v30, 2  ;;  %v543_v50 = vperm.slane %v539_v42, 2  ;;  %v565_v51 = vperm.slane %v561_v43, 3  ;;  %v571_v52 = vperm.slane %v567_v44, 3  ;;  %v461_v38 = vld [vmem:[%s1434_s1 + $0x28] sm:$0xff] }
  0x7d   : > { %v491_v53 = vsel %vm470_vm5, %v480_v45, %v487_v46  ;;  %v517_v54 = vsel %vm498_vm6, %v507_v47, %v513_v48  ;;  %v477_v55 = vperm.slane %v455_v37, 4  ;;  %v484_v56 = vperm.slane %v300_v2, 4  ;;  %700 = vperm.xlu0 %1049, %v461_v38  }
  0x7e   : > { %v521_v57 = vmul.f32 %v517_v54, %v491_v53  ;;  %v547_v58 = vsel %vm528_vm7, %v537_v49, %v543_v50  ;;  %v575_v59 = vsel %vm1282_vm8, %v565_v51, %v571_v52  ;;  %v504_v60 = vperm.slane %v455_v37, 5 }
  0x7f   : > { %v481_v61 = vperm.slane %v477_v55, 0  ;;  %v488_v62 = vperm.slane %v484_v56, 0  ;;  %v510_v63 = vperm.slane %v300_v2, 5  ;;  %v534_v0 = vperm.slane %v455_v37, 6 }
  0x80   : > { %v551_v3 = vmul.f32 %v547_v58, %v521_v57  ;;  %v508_v4 = vperm.slane %v504_v60, 1  ;;  %v540_v6 = vperm.slane %v300_v2, 6  ;;  %v562_v5 = vperm.slane %v455_v37, 7  ;;  %v459_v37 = vld [vmem:[%s1434_s1 + $0x18] sm:$0xff]  ;;  %v460_v57 = vld [vmem:[%s1434_s1 + $0x20] sm:$0xff] }
  0x81   : > { %v492_v7 = vsel %vm470_vm5, %v481_v61, %v488_v62  ;;  %v514_v8 = vperm.slane %v510_v63, 1  ;;  %v538_v9 = vperm.slane %v534_v0, 2  ;;  %v568_v10 = vperm.slane %v300_v2, 7 }
  0x82   : > { %v579_v11 = vmul.f32 %v575_v59, %v551_v3  ;;  %v544_v13 = vperm.slane %v540_v6, 2  ;;  %v566_v14 = vperm.slane %v562_v5, 3  ;;  %v489_v15 = vsel %vm469_vm9, %v480_v45, %v487_v46 }
  0x83   : > { %v518_v16 = vsel %vm498_vm6, %v508_v4, %v514_v8  ;;  %v572_v17 = vperm.slane %v568_v10, 3  ;;  %v515_v18 = vsel %vm497_vm10, %v507_v47, %v513_v48  ;;  %v545_v19 = vsel %vm527_vm11, %v537_v49, %v543_v50 }
  0x84   : > { %654 = vmatpush.msra.mxu2 %v579_v11  ;;  %v522_v20 = vmul.f32 %v518_v16, %v492_v7  ;;  %v548_v21 = vsel %vm528_vm7, %v538_v9, %v544_v13  ;;  %v519_v24 = vmul.f32 %v515_v18, %v489_v15  ;;  %v573_v27 = vsel %vm1289_vm12, %v565_v51, %v571_v52 }
  0x85   : > { %v576_v22 = vsel %vm1282_vm8, %v566_v14, %v572_v17  ;;  %v490_v28 = vsel %vm469_vm9, %v481_v61, %v488_v62  ;;  %v516_v29 = vsel %vm497_vm10, %v508_v4, %v514_v8  ;;  %v546_v32 = vsel %vm527_vm11, %v538_v9, %v544_v13  ;;  %602 = vmatpush.msra.mxu0 %v579_v11 }
  0x86   : > { %v552_v33 = vmul.f32 %v548_v21, %v522_v20  ;;  %v549_v23 = vmul.f32 %v545_v19, %v519_v24  ;;  %v520_v1 = vmul.f32 %v516_v29, %v490_v28  ;;  %v574_v34 = vsel %vm1289_vm12, %v566_v14, %v572_v17 }
  0x87   : > { %vm889_vm5 = vcmask 1046528  }
  0x88   : > { %v580_v35 = vmul.f32 %v576_v22, %v552_v33  ;;  %v577_v2 = vmul.f32 %v573_v27, %v549_v23  ;;  %v550_v36 = vmul.f32 %v546_v32, %v520_v1 }
  0x8a   : > { %677 = vmatpush.msra.mxu3 %v580_v35  ;;  %655 = vmatpush.msra.mxu2 %v577_v2  ;;  %v578_v26 = vmul.f32 %v574_v34, %v550_v36 }
  0x8b   : > { %987 = vmatmul.msk.f32.vlgmr.msra.gmra.mxu2 %vm581_vm13, %v458_v25  ;;  %625 = vmatpush.msra.mxu1 %v580_v35 }
  0x8c   : > { %678 = vmatpush.msra.mxu3 %v578_v26  ;;  %603 = vmatpush.msra.mxu0 %v577_v2 }
  0x8d   : > { %989 = vmatmul.msk.f32.vlgmr.msra.gmra.mxu3 %vm581_vm13, %v458_v25  ;;  %626 = vmatpush.msra.mxu1 %v578_v26 }
  0x8e   : > { %983 = vmatmul.msk.f32.vlgmr.msra.gmra.mxu0 %vm581_vm13, %v456_v31  ;;  %985 = vmatmul.msk.f32.vlgmr.msra.gmra.mxu1 %vm581_vm13, %v456_v31 }
  0x93   : > { %988 = vmatmul.msk.f32.gmra.mxu2 %vm581_vm13, %v459_v37 }
  0x95   : > { %990 = vmatmul.msk.f32.gmra.mxu3 %vm581_vm13, %v459_v37 }
  0x96   : > { %984 = vmatmul.msk.f32.gmra.mxu0 %vm581_vm13, %v457_v12  ;;  %986 = vmatmul.msk.f32.gmra.mxu1 %vm581_vm13, %v457_v12 }
  0xef   : > { %v701_v59 = vpop.permute.xlu0 %700 }
 0x10b   : > { %v605_v39 = vpop.f32.mrf.mxu0  ;;  %v628_v40 = vpop.f32.mrf.mxu1 }
 0x10c   : > { %v686_v46 = vmul.f32 %v605_v39, %v605_v39  ;;  %v687_v51 = vmul.f32 %v628_v40, %v628_v40 }
 0x10e   : > { %v657_v41 = vpop.f32.mrf.mxu2 }
 0x10f   : > { %v690_v47 = vmul.f32 %v657_v41, %v657_v41 }
 0x110   : > { %v680_v30 = vpop.f32.mrf.mxu3 }
 0x111   : > { %v691_v52 = vmul.f32 %v680_v30, %v680_v30  ;;  %v694_v56 = vadd.f32 %v690_v47, %v686_v46 }
 0x113   : > { %v608_v42 = vpop.f32.mrf.mxu0  ;;  %v631_v43 = vpop.f32.mrf.mxu1  ;;  %v695_v58 = vadd.f32 %v691_v52, %v687_v51 }
 0x114   : > { %v688_v44 = vmul.f32 %v608_v42, %v608_v42  ;;  %v689_v48 = vmul.f32 %v631_v43, %v631_v43 }
 0x116   : > { %v660_v45 = vpop.f32.mrf.mxu2 }
 0x117   : > { %v692_v49 = vmul.f32 %v660_v45, %v660_v45 }
 0x118   : > { %v683_v50 = vpop.f32.mrf.mxu3 }
 0x119   : > { %v693_v53 = vmul.f32 %v683_v50, %v683_v50  ;;  %v696_v54 = vadd.f32 %v692_v49, %v688_v44 }
 0x11b   : > { %720 = vmatpush.msrb.mxu0 %v696_v54  ;;  %v697_v55 = vadd.f32 %v693_v53, %v689_v48 }
 0x11d   : > { %740 = vmatpush.msrb.mxu1 %v697_v55  ;;  %721 = vmatpush.msrb.mxu0 %v694_v56 }
 0x11e   : > { %991 = vmatmul.msk.f32.vlgmr.msrb.gmra.mxu0 %vm581_vm13, %v460_v57 }
 0x11f   : > { %741 = vmatpush.msrb.mxu1 %v695_v58 }
 0x120   : > { %992 = vmatmul.msk.f32.vlgmr.msrb.gmra.mxu1 %vm581_vm13, %v460_v57 }
 0x19b   : > { %v723_v60 = vpop.f32.mrf.mxu0 }
 0x19c   : > { %v1353_v61 = vadd.f32 %v723_v60, %v701_v59 }
 0x19d   : > { %v743_v62 = vpop.f32.mrf.mxu1 }
 0x19e   : > { %v748_v63 = vand.u32 2147483647, %v1353_v61  ;;  %v1357_v0 = vmul.f32 -2.0, %v1353_v61  ;;  %v1359_v3 = vadd.f32 %v743_v62, %v701_v59  ;;  %v746_v31 = vmax.f32 %v1353_v61, 0.0 }
 0x19f   : > { %v811_v38 = vsub.f32 0.6931472, %v1353_v61 }
 0x1a0   : > { %v750_v4 = vsub.f32 0.0, %v748_v63  ;;  %v817_v6 = vand.u32 2147483647, %v1357_v0  ;;  %v749_v5 = vand.u32 2147483647, %v1359_v3  ;;  %v1364_v8 = vmul.f32 -2.0, %v1359_v3 }
 0x1a1   : > { %v815_v45 = vmax.f32 %v1357_v0, 0.0  ;;  %v747_v50 = vmax.f32 %v1359_v3, 0.0  ;;  %v812_v62 = vsub.f32 0.6931472, %v1359_v3 }
 0x1a2   : > { %v752_v7 = vmul.f32 1.442695, %v750_v4  ;;  %v819_v9 = vsub.f32 0.0, %v817_v6  ;;  %v751_v10 = vsub.f32 0.0, %v749_v5  ;;  %v818_v11 = vand.u32 2147483647, %v1364_v8 }
 0x1a3   : > { %v816_v56 = vmax.f32 %v1364_v8, 0.0 }
 0x1a4   : > { %1050 = vpow2.f32 %v752_v7  ;;  %v821_v13 = vmul.f32 1.442695, %v819_v9  ;;  %v754_v14 = vmul.f32 1.442695, %v751_v10  ;;  %v820_v15 = vsub.f32 0.0, %v818_v11 }
 0x1a6   : > { %1052 = vpow2.f32 %v821_v13  ;;  %v823_v16 = vmul.f32 1.442695, %v820_v15 }
 0x1a7   : > { %1054 = vpow2.f32 %v754_v14 }
 0x1a8   : > { %1056 = vpow2.f32 %v823_v16 }
 0x1aa   : > { %v1051_v17 = vpop.eup %1050 }
 0x1ab   : > { %v756_v18 = vadd.f32 1.0, %v1051_v17  ;;  %v759_v19 = vmul.f32 -0.5, %v1051_v17  ;;  %v762_v23 = vand.u32 2147483647, %v1051_v17 }
 0x1ac   : > { %v1053_v20 = vpop.eup %1052 }
 0x1ad   : > { %1058 = vlog2.f32 %v756_v18  ;;  %v1055_v21 = vpop.eup %1054  ;;  %v825_v24 = vadd.f32 1.0, %v1053_v20  ;;  %v828_v27 = vmul.f32 -0.5, %v1053_v20  ;;  %v760_v29 = vadd.f32 1.0, %v759_v19 }
 0x1ae   : > { %v765_v22 = vadd.f32 1.0, %v1055_v21  ;;  %v1057_v28 = vpop.eup %1056  ;;  %v768_v32 = vmul.f32 -0.5, %v1055_v21  ;;  %v831_v2 = vand.u32 2147483647, %v1053_v20  ;;  %vm763_vm14 = vcmp.lt.f32.partialorder %v762_v23, 0.0004427343 }
 0x1af   : > { %1060 = vlog2.f32 %v825_v24  ;;  %v834_v33 = vadd.f32 1.0, %v1057_v28  ;;  %v837_v1 = vmul.f32 -0.5, %v1057_v28  ;;  %v829_v35 = vadd.f32 1.0, %v828_v27 }
 0x1b0   : > { %1062 = vlog2.f32 %v765_v22  ;;  %v761_v25 = vmul.f32 %v1051_v17, %v760_v29  ;;  %v769_v26 = vadd.f32 1.0, %v768_v32  ;;  %v771_v37 = vand.u32 2147483647, %v1055_v21 }
 0x1b1   : > { %1064 = vlog2.f32 %v834_v33  ;;  %v838_v39 = vadd.f32 1.0, %v837_v1  ;;  %v830_v42 = vmul.f32 %v1053_v20, %v829_v35  ;;  %v840_v43 = vand.u32 2147483647, %v1057_v28 }
 0x1b2   : > { %vm832_vm15 = vcmp.lt.f32.partialorder %v831_v2, 0.0004427343  ;;  %v770_v47 = vmul.f32 %v1055_v21, %v769_v26  ;;  %vm772_vm0 = vcmp.lt.f32.partialorder %v771_v37, 0.0004427343 }
 0x1b3   : > { %v1059_v34 = vpop.eup %1058  ;;  %v839_v54 = vmul.f32 %v1057_v28, %v838_v39  ;;  %vm841_vm1 = vcmp.lt.f32.partialorder %v840_v43, 0.0004427343 }
 0x1b4   : > { %v758_v36 = vmul.f32 0.6931472, %v1059_v34 }
 0x1b5   : > { %v1061_v12 = vpop.eup %1060 }
 0x1b6   : > { %v764_v40 = vsel %vm763_vm14, %v761_v25, %v758_v36  ;;  %v1063_v41 = vpop.eup %1062  ;;  %v827_v30 = vmul.f32 0.6931472, %v1061_v12 }
 0x1b7   : > { %v774_v44 = vadd.f32 %v764_v40, %v746_v31  ;;  %v767_v46 = vmul.f32 0.6931472, %v1063_v41  ;;  %v1065_v48 = vpop.eup %1064 }
 0x1b8   : > { %v833_v49 = vsel %vm832_vm15, %v830_v42, %v827_v30  ;;  %v836_v53 = vmul.f32 0.6931472, %v1065_v48  ;;  %v871_v42 = vrot.slane %v1353_v61, 6 }
 0x1b9   : > { %v776_v51 = vmax.f32 %v774_v44, 1e-06  ;;  %v843_v52 = vadd.f32 %v833_v49, %v815_v45  ;;  %v773_v55 = vsel %vm772_vm0, %v770_v47, %v767_v46 }
 0x1ba   : > { %v775_v57 = vadd.f32 %v773_v55, %v747_v50  ;;  %v842_v60 = vsel %vm841_vm1, %v839_v54, %v836_v53  ;;  %v872_v53 = vrot.slane %v1359_v3, 6 }
 0x1bb   : > { %v1372_v58 = vmin.f32 %v776_v51, 10.0  ;;  %v845_v59 = vsub.f32 %v811_v38, %v843_v52  ;;  %v844_v63 = vadd.f32 %v842_v60, %v816_v56 }
 0x1bc   : > { %v777_v0 = vmax.f32 %v775_v57, 1e-06 }
 0x1bd   : > { %1066 = vlog2.f32 %v1372_v58  ;;  %v847_v4 = vmul.f32 2.0, %v845_v59  ;;  %v846_v6 = vsub.f32 %v812_v62, %v844_v63  ;;  %v877_v43 = vrot.slane %v1372_v58, 6 }
 0x1be   : > { %v1376_v5 = vmin.f32 %v777_v0, 10.0 }
 0x1bf   : > { %v849_v7 = vsel %vm792_vm2, %v847_v4, 0.0  ;;  %v848_v8 = vmul.f32 2.0, %v846_v6 }
 0x1c0   : > { %1068 = vlog2.f32 %v1376_v5  ;;  %v850_v10 = vrot.slane %v849_v7, 4 }
 0x1c1   : > { %v856_v13 = vsel %vm792_vm2, %v848_v8, 0.0  ;;  %1070 = vtanh.f32 %v1353_v61  ;;  %v878_v61 = vrot.slane %v1376_v5, 6 }
 0x1c2   : > { %v851_v16 = vadd.f32 %v850_v10, %v849_v7  ;;  %v857_v17 = vrot.slane %v856_v13, 4  ;;  %1072 = vtanh.f32 %v1359_v3 }
 0x1c3   : > { %v1067_v9 = vpop.eup %1066 }
 0x1c4   : > { %v783_v11 = vmul.f32 0.6931472, %v1067_v9  ;;  %v852_v27 = vrot.slane %v851_v16, 2  ;;  %v858_v22 = vadd.f32 %v857_v17, %v856_v13 }
 0x1c6   : > { %v788_v14 = vrot.slane %v783_v11, 2  ;;  %v1069_v15 = vpop.eup %1068  ;;  %v853_v1 = vadd.f32 %v852_v27, %v851_v16  ;;  %v859_v34 = vrot.slane %v858_v22, 2 }
 0x1c7   : > { %v785_v18 = vmul.f32 0.6931472, %v1069_v15  ;;  %v1071_v38 = vpop.eup %1070 }
 0x1c8   : > { %v793_v19 = vsel %vm792_vm2, %v788_v14, 0.0  ;;  %v854_v26 = vrot.slane %v853_v1, 1  ;;  %v860_v31 = vadd.f32 %v859_v34, %v858_v22  ;;  %v881_v46 = vsel %vm792_vm2, %v1071_v38, %v871_v42  ;;  %v1073_v50 = vpop.eup %1072 }
 0x1c9   : > { %v794_v20 = vrot.slane %v793_v19, 4  ;;  %v789_v21 = vrot.slane %v785_v18, 2  ;;  %v884_v51 = vsel %vm883_vm3, %v881_v46, %v877_v43  ;;  %v882_v57 = vsel %vm792_vm2, %v1073_v50, %v872_v53 }
 0x1ca   : > { %v855_v41 = vadd.f32 %v854_v26, %v853_v1  ;;  %v861_v30 = vrot.slane %v860_v31, 1  ;;  %v885_v58 = vsel %vm883_vm3, %v882_v57, %v878_v61 }
 0x1cb   : > { %v795_v24 = vadd.f32 %v794_v20, %v793_v19  ;;  %v800_v28 = vsel %vm792_vm2, %v789_v21, 0.0 }
 0x1cc   : > { %v801_v32 = vrot.slane %v800_v28, 4  ;;  %v862_v48 = vadd.f32 %v861_v30, %v860_v31 }
 0x1cd   : > { %v796_v29 = vrot.slane %v795_v24, 2 }
 0x1ce   : > { %v802_v23 = vadd.f32 %v801_v32, %v800_v28 }
 0x1cf   : > { %v797_v33 = vadd.f32 %v796_v29, %v795_v24 }
 0x1d0   : > { %v803_v2 = vrot.slane %v802_v23, 2 }
 0x1d1   : > { %v798_v35 = vrot.slane %v797_v33, 1 }
 0x1d2   : > { %v804_v25 = vadd.f32 %v803_v2, %v802_v23 }
 0x1d3   : > { %v799_v36 = vadd.f32 %v798_v35, %v797_v33 }
 0x1d4   : > { %v805_v37 = vrot.slane %v804_v25, 1 }
 0x1d5   : > { %v807_v12 = vsub.f32 0.0, %v799_v36 }
 0x1d6   : > { %v806_v39 = vadd.f32 %v805_v37, %v804_v25 }
 0x1d7   : > { %v993_v40 = vadd.f32 -1.837877, %v807_v12 }
 0x1d8   : > { %v808_v44 = vsub.f32 0.0, %v806_v39 }
 0x1d9   : > { %v863_v45 = vsub.f32 %v993_v40, %v855_v41 }
 0x1da   : > { %v994_v47 = vadd.f32 -1.837877, %v808_v44 }
 0x1db   : > { %v995_v49 = vclamps-f32 %v863_v45, 20.0 }
 0x1dc   : > { %v864_v52 = vsub.f32 %v994_v47, %v862_v48 }
 0x1dd   : > { %v887_v54 = vsel %vm886_vm4, %v884_v51, %v995_v49 }
 0x1de   : > { %v890_v55 = vsel %vm889_vm5, %v887_v54, 0.0  ;;  %v996_v56 = vclamps-f32 %v864_v52, 20.0 }
 0x1df   : > { %892 = vst [vmem:[%s137_s13] sm:$0xff] %v890_v55 }
 0x1e0   : > { %v888_v59 = vsel %vm886_vm4, %v885_v58, %v996_v56 }
 0x1e1   : > { %v891_v3 = vsel %vm889_vm5, %v888_v59, 0.0 }
 0x1e2   : > { %893 = vst [vmem:[%s137_s13 + $0x8] sm:$0xff] %v891_v3 }
 0x1e3   : > { %1101 = shalt.err (!%p1098_p3)
}
 0x1e4   : > { %1003 = dma.vmem_to_hbm [thread:$0]  (%p1198_p5), %s909_s25, 256, %s911_s26, %s895_s27  }
 0x1e5 PF: > { %p1009_p4 = scmp.ge.s32.totalorder %s1136_s12, 2  ;;  %s922_s7 = sand.u32 1, %s1124_s9  }
 0x1e6   : > { %s923_s8 = scalar_lea.sflag [#allocation3], %s922_s7 }
 0x1e7   : > { %p1006_p7 = pnand %p1009_p4, %p1202_p6 }
 0x1e9   : > { %p1007_p8 = pneg %p1006_p7 }
 0x1eb   : > { %1119 = dma.done.wait (%p1007_p8), %s923_s8, 256  }
 0x1ec   : > { %1121 = vsyncadd (%p1007_p8), %s923_s8, 4294967040  ;;  %p12_p9 = scmp.ge.s32.totalorder %s1185_s15, 4   ;;  %s1442_s9 = smov %s1128_s10 }
 0x1ed   : > { %s1443_s10 = smov %s1132_s11  ;;  %s1444_s11 = smov %s1196_s18 }
 0x1ee   : > { %s1445_s12 = smov %s1185_s15  ;;  %14 = sbr.rel (!%p12_p9) target bundleno = 3 (0x3), region = 63 }
 0x1f3   :  { %929 = vsyncpa [#allocation3], 1 }
 0x1f4   :  { %931 = vsyncpa [#allocation3 + $0x1], 1 }

</bundles_post_ra>
